<compile_context>
chip_gen: v5e
topology: v5e:2x2
jax: 0.10.0
libtpu: 0.0.40
codegen_flags: <defaults>
</compile_context>

<pallas_src>
import numpy as np
import jax
import jax.numpy as jnp
from jax.experimental import pallas as pl
from jax.experimental.pallas import tpu as pltpu

LANE = 128  # one f32 vreg lane width; the task axis is padded to this.


def _build_uncertainty_fn(n_cat: int, n_tasks: int):
    """Builds the pallas-backed, custom_vjp-wrapped vector forward.

    Lane layout: [0, n_cat) categorical (scale 2), [n_cat, n_tasks) continuous
    (scale 1), [n_tasks, LANE) padding (scale 0 -> zero output & gradient).
    """

    def kernel(loss_ref, lv_ref, out_ref, total_ref, dloss_ref, dlv_ref):
        loss = loss_ref[...]                        # (1, LANE) f32
        lv = lv_ref[...]                            # (1, LANE) f32
        # Compile-time scale constant built from iota (no dense vector const,
        # no extra input DMA).
        lane = jax.lax.broadcasted_iota(jnp.int32, (1, LANE), 1)
        scale = jnp.where(
            lane < n_cat, 2.0, jnp.where(lane < n_tasks, 1.0, 0.0)
        ).astype(jnp.float32)
        precision = jnp.exp(-lv)                    # EUP transcendental
        weighted = scale * (precision * loss + lv)
        out_ref[...] = weighted
        # Fused total-loss reduction (saves a separate XLA reduction launch).
        total_ref[...] = jnp.sum(weighted, axis=-1, keepdims=True)
        # Backward residuals, reusing the same exp(-log_var): free VPU filler.
        dloss_ref[...] = scale * precision                    # d out_c / d loss_c
        dlv_ref[...] = scale * (1.0 - precision * loss)       # d out_c / d log_var_c

    vmem = pltpu.MemorySpace.VMEM
    call = pl.pallas_call(
        kernel,
        out_shape=(
            jax.ShapeDtypeStruct((1, LANE), jnp.float32),  # per-task weighted loss
            jax.ShapeDtypeStruct((1, 1), jnp.float32),     # total (sum over tasks)
            jax.ShapeDtypeStruct((1, LANE), jnp.float32),  # d/d loss residual
            jax.ShapeDtypeStruct((1, LANE), jnp.float32),  # d/d log_var residual
        ),
        in_specs=[pl.BlockSpec(memory_space=vmem),
                  pl.BlockSpec(memory_space=vmem)],
        out_specs=(pl.BlockSpec(memory_space=vmem),
                   pl.BlockSpec(memory_space=vmem),
                   pl.BlockSpec(memory_space=vmem),
                   pl.BlockSpec(memory_space=vmem)),
    )

    def _run(losses_vec, log_vars_vec):
        out, total, dloss, dlv = call(
            losses_vec.reshape(1, LANE).astype(jnp.float32),
            log_vars_vec.reshape(1, LANE).astype(jnp.float32),
        )
        return out[0], total[0, 0], dloss[0], dlv[0]

    @jax.custom_vjp
    def uncertainty(losses_vec, log_vars_vec):
        out, total, _, _ = _run(losses_vec, log_vars_vec)
        return out, total

    def uncertainty_fwd(losses_vec, log_vars_vec):
        out, total, dloss, dlv = _run(losses_vec, log_vars_vec)
        return (out, total), (dloss, dlv)

    def uncertainty_bwd(residuals, cotangents):
        dloss, dlv = residuals
        g_out, g_total = cotangents          # (LANE,) and scalar
        g = g_out + g_total                  # total is a plain sum over tasks
        return (g * dloss, g * dlv)

    uncertainty.defvjp(uncertainty_fwd, uncertainty_bwd)
    return uncertainty


class UncertaintyMultiTaskLossJAX:
    """JAX/Pallas port of eir UncertaintyMultiTaskLoss.

    Hot path: `forward_vec(losses_vec, log_vars)` -> (per_task_vec[LANE], total).
    Inline it into your train_step jit; `pack_losses` maps the dict onto the
    fixed column order.  The dict->dict `__call__` mirrors the PyTorch module's
    interface for compatibility only.

    # TODO(synk): log_vars is a plain device-array attribute; wiring it into an
    # optimizer pytree / train state is left to the caller.
    """

    def __init__(self, target_cat_columns, target_con_columns):
        self.target_cat_columns = list(target_cat_columns)
        self.target_con_columns = list(target_con_columns)
        self.columns = tuple(self.target_cat_columns + self.target_con_columns)
        n = len(self.columns)
        assert 0 < n <= LANE, "more tasks than one lane tile; tile the task axis"
        self.num_tasks = n

        # Learnable per-task log-variance, zero-init, padded to one lane tile.
        self.log_vars = jnp.zeros((LANE,), jnp.float32)

        # Un-jitted vector forward (for inlining into a caller's jit) and a
        # jitted copy for standalone use.
        self.forward_vec = _build_uncertainty_fn(
            n_cat=len(self.target_cat_columns), n_tasks=n)
        self._forward_vec_jit = jax.jit(self.forward_vec)

    def pack_losses(self, losses_dict):
        """dict of scalar losses -> padded f32[LANE] vector (column order)."""
        vals = [jnp.asarray(losses_dict[c], jnp.float32).reshape(())
                for c in self.columns]
        return jnp.pad(jnp.stack(vals), (0, LANE - self.num_tasks))

    def __call__(self, losses_dict):
        assert set(losses_dict.keys()) == set(self.columns), (
            "losses_dict keys must exactly match the configured target columns"
        )
        losses_vec = self.pack_losses(losses_dict)
        out_vec, _ = self._forward_vec_jit(losses_vec, self.log_vars)
        # Compatibility split: per-column slicing stays outside the kernel and
        # outside the jitted hot path.
        return {c: out_vec[i] for i, c in enumerate(self.columns)}


if __name__ == "__main__":
    target_cat_columns = ["cat_a", "cat_b"]
    target_con_columns = ["con_a", "con_b", "con_c"]
    cols = target_cat_columns + target_con_columns
    n = len(cols)
    module = UncertaintyMultiTaskLossJAX(target_cat_columns, target_con_columns)

    key = jax.random.PRNGKey(0)
    k_loss, k_lv = jax.random.split(key)
    base_losses = jax.random.uniform(k_loss, (n,), dtype=jnp.float32) * 2.0
    losses_dict = {c: base_losses[i] for i, c in enumerate(cols)}
    loss_np = np.asarray(base_losses)
    scale_np = np.array([2.0 if c in target_cat_columns else 1.0 for c in cols],
                        np.float32)

    # --- pass 1: zero-init log_vars (precision == 1), dict-compat path ------
    out = module(losses_dict)
    jax.block_until_ready(out)
    for i, c in enumerate(cols):
        ref = scale_np[i] * (np.exp(-0.0) * loss_np[i] + 0.0)
        assert np.allclose(np.asarray(out[c]), ref, atol=1e-6, rtol=1e-6), (c, out[c], ref)

    # --- pass 2: non-trivial log_vars, vector hot path + fused total --------
    new_lv = jax.random.normal(k_lv, (n,), dtype=jnp.float32) * 0.5
    module.log_vars = module.log_vars.at[:n].set(new_lv)
    lv_np = np.asarray(new_lv)

    losses_vec = module.pack_losses(losses_dict)
    out_vec, total = module._forward_vec_jit(losses_vec, module.log_vars)
    jax.block_until_ready((out_vec, total))

    ref_vec = scale_np * (np.exp(-lv_np) * loss_np + lv_np)
    assert np.allclose(np.asarray(out_vec)[:n], ref_vec, atol=1e-4, rtol=1e-4)
    assert np.allclose(np.asarray(out_vec)[n:], 0.0)
    assert np.allclose(float(total), float(ref_vec.sum()), atol=1e-4, rtol=1e-4)

    # --- pass 3: gradients through the custom_vjp (log_vars are trainable) --
    def total_loss(losses_v, lv_v):
        _, tot = module.forward_vec(losses_v, lv_v)
        return tot

    g_loss, g_lv = jax.jit(jax.grad(total_loss, argnums=(0, 1)))(
        losses_vec, module.log_vars)
    jax.block_until_ready((g_loss, g_lv))

    ref_g_loss = scale_np * np.exp(-lv_np)
    ref_g_lv = scale_np * (1.0 - np.exp(-lv_np) * loss_np)
    assert np.allclose(np.asarray(g_loss)[:n], ref_g_loss, atol=1e-4, rtol=1e-4)
    assert np.allclose(np.asarray(g_lv)[:n], ref_g_lv, atol=1e-4, rtol=1e-4)
    assert np.allclose(np.asarray(g_loss)[n:], 0.0)   # padding lanes get no grad
    assert np.allclose(np.asarray(g_lv)[n:], 0.0)

    print("KERNEL_OK")
</pallas_src>

<mosaic_0001>
module attributes {stable_mosaic.version = 11 : i64} {
  func.func @kernel(%arg0: memref<1x128xf32, #tpu.memory_space<vmem>>, %arg1: memref<1x128xf32, #tpu.memory_space<vmem>>, %arg2: memref<1x128xf32, #tpu.memory_space<vmem>>, %arg3: memref<1x1xf32, #tpu.memory_space<vmem>>, %arg4: memref<1x128xf32, #tpu.memory_space<vmem>>, %arg5: memref<1x128xf32, #tpu.memory_space<vmem>>) attributes {dimension_semantics = [], scalar_prefetch = 0 : i64, scratch_operands = 0 : i64, tpu.core_type = #tpu.core_type<tc>} {
    %c0 = arith.constant 0 : index
    %c0_0 = arith.constant 0 : index
    %0 = vector.load %arg0[%c0, %c0_0] : memref<1x128xf32, #tpu.memory_space<vmem>>, vector<1x128xf32>
    %c0_1 = arith.constant 0 : index
    %c0_2 = arith.constant 0 : index
    %1 = vector.load %arg1[%c0_1, %c0_2] : memref<1x128xf32, #tpu.memory_space<vmem>>, vector<1x128xf32>
    %2 = tpu.iota {dimensions = array<i32: 1>} : vector<1x128xi32>
    %c2_i32 = arith.constant 2 : i32
    %3 = vector.broadcast %c2_i32 : i32 to vector<1x128xi32>
    %4 = arith.cmpi slt, %2, %3 : vector<1x128xi32>
    %c5_i32 = arith.constant 5 : i32
    %5 = vector.broadcast %c5_i32 : i32 to vector<1x128xi32>
    %6 = arith.cmpi slt, %2, %5 : vector<1x128xi32>
    %cst = arith.constant 1.000000e+00 : f32
    %cst_3 = arith.constant 0.000000e+00 : f32
    %7 = vector.broadcast %cst : f32 to vector<1x128xf32>
    %8 = vector.broadcast %cst_3 : f32 to vector<1x128xf32>
    %9 = arith.select %6, %7, %8 : vector<1x128xi1>, vector<1x128xf32>
    %cst_4 = arith.constant 2.000000e+00 : f32
    %10 = vector.broadcast %cst_4 : f32 to vector<1x128xf32>
    %11 = arith.select %4, %10, %9 : vector<1x128xi1>, vector<1x128xf32>
    %cst_5 = arith.constant 0.000000e+00 : f32
    %12 = vector.broadcast %cst_5 : f32 to vector<1x128xf32>
    %13 = arith.subf %12, %1 : vector<1x128xf32>
    %14 = math.exp %13 : vector<1x128xf32>
    %15 = arith.mulf %14, %0 : vector<1x128xf32>
    %16 = arith.addf %15, %1 : vector<1x128xf32>
    %17 = arith.mulf %11, %16 : vector<1x128xf32>
    %c0_6 = arith.constant 0 : index
    %c0_7 = arith.constant 0 : index
    %18 = vector.load %arg2[%c0_6, %c0_7] : memref<1x128xf32, #tpu.memory_space<vmem>>, vector<1x128xf32>
    tpu.vector_store %arg2[%c0_6, %c0_7], %17 {strides = array<i32>} : memref<1x128xf32, #tpu.memory_space<vmem>>, vector<1x128xf32>,
    %cst_8 = arith.constant dense<0.000000e+00> : vector<1xf32>
    %19 = vector.multi_reduction <add>, %17, %cst_8 [1] : vector<1x128xf32> to vector<1xf32>
    %20 = vector.shape_cast %19 : vector<1xf32> to vector<1x1xf32>
    %c0_9 = arith.constant 0 : index
    %c0_10 = arith.constant 0 : index
    %21 = vector.load %arg3[%c0_9, %c0_10] : memref<1x1xf32, #tpu.memory_space<vmem>>, vector<1x1xf32>
    tpu.vector_store %arg3[%c0_9, %c0_10], %20 {strides = array<i32>} : memref<1x1xf32, #tpu.memory_space<vmem>>, vector<1x1xf32>,
    %22 = arith.mulf %11, %14 : vector<1x128xf32>
    %c0_11 = arith.constant 0 : index
    %c0_12 = arith.constant 0 : index
    %23 = vector.load %arg4[%c0_11, %c0_12] : memref<1x128xf32, #tpu.memory_space<vmem>>, vector<1x128xf32>
    tpu.vector_store %arg4[%c0_11, %c0_12], %22 {strides = array<i32>} : memref<1x128xf32, #tpu.memory_space<vmem>>, vector<1x128xf32>,
    %24 = arith.mulf %14, %0 : vector<1x128xf32>
    %cst_13 = arith.constant 1.000000e+00 : f32
    %25 = vector.broadcast %cst_13 : f32 to vector<1x128xf32>
    %26 = arith.subf %25, %24 : vector<1x128xf32>
    %27 = arith.mulf %11, %26 : vector<1x128xf32>
    %c0_14 = arith.constant 0 : index
    %c0_15 = arith.constant 0 : index
    %28 = vector.load %arg5[%c0_14, %c0_15] : memref<1x128xf32, #tpu.memory_space<vmem>>, vector<1x128xf32>
    tpu.vector_store %arg5[%c0_14, %c0_15], %27 {strides = array<i32>} : memref<1x128xf32, #tpu.memory_space<vmem>>, vector<1x128xf32>,
    return
  }
}

</mosaic_0001>

<bundles_post_ra>
// kernel: uncertainty.1
= control target key start
LH: loop header
LB: loop body
LE: loop exit
PB: predicated region body
PF: predicated region fallthrough
CT: control target
= control target key end

     0   :  { %11 = vsyncpa [#allocation3], 0  ;;  %s269_s0 = inlined_call_operand.vmem [shape: f32[1,128], index: 0, kind: input, shape index: {}]   ;;  %s270_s1 = inlined_call_operand.vmem [shape: f32[1,128], index: 1, kind: input, shape index: {}]   ;;  %s271_s2 = inlined_call_operand.hbm [shape: f32[1,128], index: 2, kind: output, shape index: {0}]   ;;  %s272_s3 = inlined_call_operand.hbm [shape: f32[1,1], index: 3, kind: output, shape index: {1}]   ;;  %s273_s4 = inlined_call_operand.hbm [shape: f32[1,128], index: 4, kind: output, shape index: {2}]   ;;  %s274_s5 = inlined_call_operand.hbm [shape: f32[1,128], index: 5, kind: output, shape index: {3}]  }
   0x1   :  { %12 = vsyncpa [#allocation5], 0  ;;  %v19_v0 = vld [vmem:[%s270_s1] sm:$0x1]  ;;  %v20_v1 = vlaneseq }
   0x2   :  { %v26_v2 = vsub.f32 0.0, %v19_v0 }
   0x3   :  { %13 = vsyncpa [#allocation8], 0  ;;  %v21_v3 = vand.u32 127, %v20_v1  ;;  %v18_v5 = vld [vmem:[%s269_s0] sm:$0x1]  ;;  %v216_v6 = vmov 0.0  }
   0x4   :  { %v27_v4 = vmul.f32 1.442695, %v26_v2  ;;  %s217_s22 = smov [#allocation2]   ;;  %s51_s25 = sshll.u32 %s271_s2, 4  ;;  %vm33_vm2 = vcmask 1040384   ;;  %vm37_vm3 = vcmask 0   ;;  %s52_s25 = int_to_ptr.hbm [resolvable:$true] %s51_s25 }
   0x5   :  { %vm23_vm0 = vcmp.lt.s32.totalorder %v21_v3, 5  ;;  %vm22_vm1 = vcmp.lt.s32.totalorder %v21_v3, 2  ;;  %s49_s23 = sshll.u32 %s217_s22, 4  ;;  %s218_s0 = smov [#allocation7]   ;;  %s50_s23 = int_to_ptr.vmem [resolvable:$true] %s49_s23 }
   0x6   :  { %112 = vpow2.f32 %v27_v4  ;;  %v24_v7 = vsel %vm23_vm0, 1.0, %v216_v6  ;;  %s82_s26 = sshll.u32 %s218_s0, 4  ;;  %s84_s29 = sshll.u32 %s274_s5, 4  ;;  %s83_s26 = int_to_ptr.vmem [resolvable:$true] %s82_s26  ;;  %s85_s29 = int_to_ptr.hbm [resolvable:$true] %s84_s29 }
   0x7   :  { %v25_v10 = vsel %vm22_vm1, 2.0, %v24_v7  ;;  %s219_s2 = smov [#allocation4]   ;;  %s62_s8 = sshll.u32 %s272_s3, 4  ;;  %s63_s8 = int_to_ptr.hbm [resolvable:$true] %s62_s8 }
   0x8   :  { %s60_s30 = sshll.u32 %s219_s2, 4  ;;  %s220_s9 = smov [#allocation6]   ;;  %s61_s30 = int_to_ptr.vmem [resolvable:$true] %s60_s30 }
   0x9   :  { %s71_s10 = sshll.u32 %s220_s9, 4  ;;  %s73_s13 = sshll.u32 %s273_s4, 4  ;;  %s72_s10 = int_to_ptr.vmem [resolvable:$true] %s71_s10  ;;  %s74_s13 = int_to_ptr.hbm [resolvable:$true] %s73_s13 }
   0xc   :  { %v113_v8 = vpop.eup %112 }
   0xd   :  { %v29_v9 = vmul.f32 %v113_v8, %v18_v5  ;;  %v39_v15 = vmul.f32 %v113_v8, %v25_v10 }
   0xf   :  { %v30_v11 = vadd.f32 %v29_v9, %v19_v0  ;;  %v41_v14 = vsub.f32 1.0, %v29_v9  ;;  %40 = vst [vmem:[#allocation6] sm:$0x1] %v39_v15 }
  0x11   :  { %v31_v12 = vmul.f32 %v30_v11, %v25_v10  ;;  %v42_v16 = vmul.f32 %v41_v14, %v25_v10 }
  0x13   :  { %v34_v13 = vsel %vm33_vm2, %v31_v12, 0.0  ;;  %32 = vst [vmem:[#allocation2] sm:$0x1] %v31_v12 }
  0x14   :  { %35 = vadd.xlane.f32.xlu0 %v34_v13  ;;  %54 = dma.vmem_to_hbm [thread:$0]  %s50_s23, 16, %s52_s25, [#allocation3]   ;;  %43 = vst [vmem:[#allocation7] sm:$0x1] %v42_v16 }
  0x15   :  { %87 = dma.vmem_to_hbm [thread:$0]  %s83_s26, 16, %s85_s29, [#allocation8]  }
  0x87   :  { %v36_v17 = vpop.xlane.xlu0 %35 }
  0x88   :  { %38 = vst.msk [vmem:[#allocation4] sm:$0x1] %vm37_vm3, %v36_v17 }
  0x89   :  { %65 = dma.vmem_to_hbm [thread:$0]  %s61_s30, 16, %s63_s8, [#allocation5]  }
  0x8a   :  { %76 = dma.vmem_to_hbm [thread:$0]  %s72_s10, 16, %s74_s13, [#allocation5]  }
  0x8b   :  { %210 = dma.done.wait [#allocation3], 16  }
  0x8c   :  { %211 = vsyncadd [#allocation3], 4294967280 }
  0x8d   :  { %212 = dma.done.wait [#allocation5], 32  }
  0x8e   :  { %213 = vsyncadd [#allocation5], 4294967264 }
  0x8f   :  { %214 = dma.done.wait [#allocation8], 16  }
  0x90   :  { %215 = vsyncadd [#allocation8], 4294967280 }
  0x91   :  { %104 = vsyncpa [#allocation3], 1 }
  0x92   :  { %105 = vsyncpa [#allocation5], 1 }
  0x93   :  { %106 = vsyncpa [#allocation8], 1 }

</bundles_post_ra>
